<compile_context>
chip_gen: v6e
topology: v6e:2x2x1
jax: 0.10.0
libtpu: 0.0.40
codegen_flags: <defaults>
</compile_context>

<pallas_src>
import functools

import jax
import jax.numpy as jnp
from jax.experimental import pallas as pl
from jax.experimental.pallas import tpu as pltpu

N_TOKENS = 10  # number of soft-prompt tokens (matches the module's n_tokens)


def _round_up(x, m):
    return ((x + m - 1) // m) * m


def _gather_kernel(idx_ref, learned_hbm, wte_hbm, out_ref, gather_buf, sem,
                   *, seq_pad, tile, nbuf, n_tokens):
    # idx_ref:     SMEM [B*seq_pad] int32, combined gather indices (scalar prefetch)
    # learned_hbm: HBM  [n_tokens, D]  (memory_space=ANY)
    # wte_hbm:     HBM  [V, D]         (memory_space=ANY)
    # out_ref:     VMEM [tile, D]      (batch dim squeezed by BlockSpec)
    # gather_buf:  VMEM [tile, D] scratch
    # sem:         DMA semaphores, shape (nbuf,)
    b = pl.program_id(0)
    jt = pl.program_id(1)
    base = b * seq_pad + jt * tile

    def start_row(r):
        row = idx_ref[base + r]
        slot = r % nbuf
        dst = gather_buf.at[pl.ds(r, 1), :]

        @pl.when(row < n_tokens)
        def _():
            pltpu.make_async_copy(
                learned_hbm.at[pl.ds(row, 1), :], dst, sem.at[slot]).start()

        @pl.when(row >= n_tokens)
        def _():
            pltpu.make_async_copy(
                wte_hbm.at[pl.ds(row - n_tokens, 1), :], dst, sem.at[slot]).start()

    def wait_row(r):
        # Both possible sources transfer the same (1, D) row; the descriptor here
        # only fixes the expected byte count + semaphore slot + destination dep.
        pltpu.make_async_copy(
            wte_hbm.at[pl.ds(0, 1), :],
            gather_buf.at[pl.ds(r, 1), :],
            sem.at[r % nbuf]).wait()

    # Prime the DMA ring: nbuf row gathers in flight.
    @pl.loop(0, nbuf)
    def _(r):
        start_row(r)

    # Steady state: retire the oldest, launch the next.
    @pl.loop(nbuf, tile)
    def _(r):
        wait_row(r - nbuf)
        start_row(r)

    # Drain the ring.
    @pl.loop(tile - nbuf, tile)
    def _(r):
        wait_row(r)

    # Single aligned full-tile store to the pipelined output block.
    out_ref[...] = gather_buf[...]


def prompt_embedding_forward(tokens, wte_weight, learned_embedding,
                             *, n_tokens=N_TOKENS, tile_tokens=256, nbuf=8):
    """tokens: [B, S] int32; wte_weight: [V, D]; learned_embedding: [n_tokens, D]."""
    B, S = tokens.shape
    V, D = wte_weight.shape
    assert learned_embedding.shape == (n_tokens, D)
    assert learned_embedding.dtype == wte_weight.dtype
    assert S >= n_tokens

    tokens = jnp.clip(tokens.astype(jnp.int32), 0, V - 1)  # guard OOB token ids

    # Combined gather index: first n_tokens positions point at the learned table
    # (rows 0..n_tokens-1); the rest point at wte, offset by n_tokens.
    pos = jnp.arange(S, dtype=jnp.int32)[None, :]
    idx = jnp.where(pos < n_tokens, pos, tokens + n_tokens)          # [B, S]

    # Tile the sequence axis ((8,128)-aligned output blocks); pad the tail.
    tile = min(tile_tokens, _round_up(S, 8))
    seq_pad = _round_up(S, tile)
    if seq_pad != S:
        idx = jnp.pad(idx, ((0, 0), (0, seq_pad - S)))  # padded rows -> learned[0]
    idx_flat = idx.reshape(B * seq_pad)                 # 1-D SMEM prefetch (tight padding)

    nbuf = min(nbuf, tile)
    grid = (B, seq_pad // tile)

    kernel = functools.partial(
        _gather_kernel, seq_pad=seq_pad, tile=tile, nbuf=nbuf, n_tokens=n_tokens)

    out = pl.pallas_call(
        kernel,
        out_shape=jax.ShapeDtypeStruct((B, seq_pad, D), wte_weight.dtype),
        grid_spec=pltpu.PrefetchScalarGridSpec(
            num_scalar_prefetch=1,
            grid=grid,
            in_specs=[
                pl.BlockSpec(memory_space=pl.ANY),   # learned table stays in HBM
                pl.BlockSpec(memory_space=pl.ANY),   # wte table stays in HBM
            ],
            out_specs=pl.BlockSpec((None, tile, D), lambda b, jt, idx: (b, jt, 0)),
            scratch_shapes=[
                pltpu.VMEM((tile, D), wte_weight.dtype),
                pltpu.SemaphoreType.DMA((nbuf,)),
            ]),
        compiler_params=pltpu.CompilerParams(
            dimension_semantics=("parallel", "parallel")),
    )(idx_flat, learned_embedding, wte_weight)

    return out[:, :S, :]


def reference_forward(tokens, wte_weight, learned_embedding):
    B = tokens.shape[0]
    input_embedding = wte_weight[tokens[:, N_TOKENS:]]                 # [B, S-n, D]
    learned = jnp.broadcast_to(learned_embedding[None],
                               (B,) + learned_embedding.shape)         # [B, n, D]
    return jnp.concatenate([learned, input_embedding], axis=1)         # [B, S, D]


if __name__ == "__main__":
    key = jax.random.PRNGKey(0)
    k_wte, k_tok = jax.random.split(key)

    B = 2             # batch
    S = N_TOKENS + 8  # full sequence length (first n_tokens positions are placeholders)
    V = 64            # vocab size
    D = 128           # embedding dim (lane-aligned)

    # Deterministic parameter init (nn.Embedding weight analogue).
    wte_weight = jax.random.normal(k_wte, (V, D), dtype=jnp.float32)
    # initialize_from_vocab=True -> learned_embedding = wte.weight[:n_tokens]
    learned_embedding = wte_weight[:N_TOKENS]

    tokens = jax.random.randint(k_tok, (B, S), 0, V, dtype=jnp.int32)

    out = prompt_embedding_forward(tokens, wte_weight, learned_embedding)
    out = jax.block_until_ready(out)

    ref = reference_forward(tokens, wte_weight, learned_embedding)
    assert out.shape == (B, S, D)
    assert jnp.allclose(out, ref), "Pallas output mismatch vs reference"

    print("KERNEL_OK")
</pallas_src>

<mosaic_0001>
module attributes {stable_mosaic.version = 11 : i64} {
  func.func @_gather_kernel(%arg0: i32, %arg1: i32, %arg2: memref<48xi32, #tpu.memory_space<smem>>, %arg3: memref<10x128xf32, #tpu.memory_space<any>>, %arg4: memref<64x128xf32, #tpu.memory_space<any>>, %arg5: memref<1x24x128xf32, #tpu.memory_space<vmem>>, %arg6: memref<24x128xf32, #tpu.memory_space<vmem>>, %arg7: memref<8x!tpu.dma_semaphore, #tpu.memory_space<semaphore_mem>>) attributes {dimension_semantics = [#tpu.dimension_semantics<parallel>, #tpu.dimension_semantics<parallel>], iteration_bounds = array<i64: 2, 1>, scalar_prefetch = 1 : i64, scratch_operands = 2 : i64, tpu.core_type = #tpu.core_type<tc>, window_params = [{}, {}, {transform_indices = @transform_2, window_bounds = array<i64: 1, 24, 128>}]} {
    %c24_i32 = arith.constant 24 : i32
    %0 = arith.muli %arg0, %c24_i32 : i32
    %c24_i32_0 = arith.constant 24 : i32
    %1 = arith.muli %arg1, %c24_i32_0 : i32
    %2 = arith.addi %0, %1 : i32
    %c0_i32 = arith.constant 0 : i32
    %c8_i32 = arith.constant 8 : i32
    %3 = arith.addi %c0_i32, %c8_i32 : i32
    %c1_i32 = arith.constant 1 : i32
    scf.for %arg8 = %c0_i32 to %3 step %c1_i32  : i32 {
      %c1_i32_13 = arith.constant 1 : i32
      %10 = arith.muli %arg8, %c1_i32_13 : i32
      %c0_i32_14 = arith.constant 0 : i32
      %11 = arith.addi %c0_i32_14, %10 : i32
      %12 = arith.addi %2, %11 : i32
      %13 = arith.index_cast %12 : i32 to index
      %14 = memref.load %arg2[%13] : memref<48xi32, #tpu.memory_space<smem>>
      %c8_i32_15 = arith.constant 8 : i32
      %c0_i32_16 = arith.constant 0 : i32
      %15 = arith.cmpi eq, %c8_i32_15, %c0_i32_16 : i32
      %c1_i32_17 = arith.constant 1 : i32
      %16 = arith.select %15, %c1_i32_17, %c8_i32_15 : i32
      %17 = arith.remsi %11, %16 : i32
      %c0_i32_18 = arith.constant 0 : i32
      %18 = arith.cmpi ne, %17, %c0_i32_18 : i32
      %c0_i32_19 = arith.constant 0 : i32
      %19 = arith.cmpi slt, %17, %c0_i32_19 : i32
      %c0_i32_20 = arith.constant 0 : i32
      %20 = arith.cmpi slt, %16, %c0_i32_20 : i32
      %21 = arith.xori %19, %20 : i1
      %22 = arith.andi %21, %18 : i1
      %23 = arith.addi %17, %16 : i32
      %24 = arith.select %22, %23, %17 : i32
      %c10_i32 = arith.constant 10 : i32
      %25 = arith.cmpi slt, %14, %c10_i32 : i32
      %26 = arith.extui %25 : i1 to i32
      %c0_i32_21 = arith.constant 0 : i32
      %27 = arith.cmpi ne, %26, %c0_i32_21 : i32
      scf.if %27 {
        %c0_i32_24 = arith.constant 0 : i32
        %31 = tpu.memref_slice %arg3[%14, %c0_i32_24] : memref<10x128xf32, #tpu.memory_space<any>> -> memref<1x128xf32, #tpu.memory_space<any>>
        %c0_i32_25 = arith.constant 0 : i32
        %32 = tpu.memref_slice %arg6[%11, %c0_i32_25] : memref<24x128xf32, #tpu.memory_space<vmem>> -> memref<1x128xf32, #tpu.memory_space<vmem>>
        %33 = tpu.memref_slice %arg7[%24] : memref<8x!tpu.dma_semaphore, #tpu.memory_space<semaphore_mem>> -> memref<1x!tpu.dma_semaphore, #tpu.memory_space<semaphore_mem>>
        %34 = tpu.memref_squeeze %33 : memref<1x!tpu.dma_semaphore, #tpu.memory_space<semaphore_mem>> -> memref<!tpu.dma_semaphore, #tpu.memory_space<semaphore_mem>>
        tpu.enqueue_dma source(%31 : memref<1x128xf32, #tpu.memory_space<any>>) target(%32 : memref<1x128xf32, #tpu.memory_space<vmem>>) target_semaphore(%34 : memref<!tpu.dma_semaphore, #tpu.memory_space<semaphore_mem>>)
      } else {
      }
      %c10_i32_22 = arith.constant 10 : i32
      %28 = arith.cmpi sge, %14, %c10_i32_22 : i32
      %29 = arith.extui %28 : i1 to i32
      %c0_i32_23 = arith.constant 0 : i32
      %30 = arith.cmpi ne, %29, %c0_i32_23 : i32
      scf.if %30 {
        %c10_i32_24 = arith.constant 10 : i32
        %31 = arith.subi %14, %c10_i32_24 : i32
        %c0_i32_25 = arith.constant 0 : i32
        %32 = tpu.memref_slice %arg4[%31, %c0_i32_25] : memref<64x128xf32, #tpu.memory_space<any>> -> memref<1x128xf32, #tpu.memory_space<any>>
        %c0_i32_26 = arith.constant 0 : i32
        %33 = tpu.memref_slice %arg6[%11, %c0_i32_26] : memref<24x128xf32, #tpu.memory_space<vmem>> -> memref<1x128xf32, #tpu.memory_space<vmem>>
        %34 = tpu.memref_slice %arg7[%24] : memref<8x!tpu.dma_semaphore, #tpu.memory_space<semaphore_mem>> -> memref<1x!tpu.dma_semaphore, #tpu.memory_space<semaphore_mem>>
        %35 = tpu.memref_squeeze %34 : memref<1x!tpu.dma_semaphore, #tpu.memory_space<semaphore_mem>> -> memref<!tpu.dma_semaphore, #tpu.memory_space<semaphore_mem>>
        tpu.enqueue_dma source(%32 : memref<1x128xf32, #tpu.memory_space<any>>) target(%33 : memref<1x128xf32, #tpu.memory_space<vmem>>) target_semaphore(%35 : memref<!tpu.dma_semaphore, #tpu.memory_space<semaphore_mem>>)
      } else {
      }
    }
    %c8_i32_1 = arith.constant 8 : i32
    %c0_i32_2 = arith.constant 0 : i32
    %c16_i32 = arith.constant 16 : i32
    %4 = arith.addi %c0_i32_2, %c16_i32 : i32
    %c1_i32_3 = arith.constant 1 : i32
    scf.for %arg8 = %c0_i32_2 to %4 step %c1_i32_3  : i32 {
      %c1_i32_13 = arith.constant 1 : i32
      %10 = arith.muli %arg8, %c1_i32_13 : i32
      %c8_i32_14 = arith.constant 8 : i32
      %11 = arith.addi %c8_i32_14, %10 : i32
      %c8_i32_15 = arith.constant 8 : i32
      %12 = arith.subi %11, %c8_i32_15 : i32
      %c8_i32_16 = arith.constant 8 : i32
      %c0_i32_17 = arith.constant 0 : i32
      %13 = arith.cmpi eq, %c8_i32_16, %c0_i32_17 : i32
      %c1_i32_18 = arith.constant 1 : i32
      %14 = arith.select %13, %c1_i32_18, %c8_i32_16 : i32
      %15 = arith.remsi %12, %14 : i32
      %c0_i32_19 = arith.constant 0 : i32
      %16 = arith.cmpi ne, %15, %c0_i32_19 : i32
      %c0_i32_20 = arith.constant 0 : i32
      %17 = arith.cmpi slt, %15, %c0_i32_20 : i32
      %c0_i32_21 = arith.constant 0 : i32
      %18 = arith.cmpi slt, %14, %c0_i32_21 : i32
      %19 = arith.xori %17, %18 : i1
      %20 = arith.andi %19, %16 : i1
      %21 = arith.addi %15, %14 : i32
      %22 = arith.select %20, %21, %15 : i32
      %c0_i32_22 = arith.constant 0 : i32
      %c0_i32_23 = arith.constant 0 : i32
      %23 = tpu.memref_slice %arg4[%c0_i32_22, %c0_i32_23] : memref<64x128xf32, #tpu.memory_space<any>> -> memref<1x128xf32, #tpu.memory_space<any>>
      %c0_i32_24 = arith.constant 0 : i32
      %24 = tpu.memref_slice %arg6[%12, %c0_i32_24] : memref<24x128xf32, #tpu.memory_space<vmem>> -> memref<1x128xf32, #tpu.memory_space<vmem>>
      %25 = tpu.memref_slice %arg7[%22] : memref<8x!tpu.dma_semaphore, #tpu.memory_space<semaphore_mem>> -> memref<1x!tpu.dma_semaphore, #tpu.memory_space<semaphore_mem>>
      %26 = tpu.memref_squeeze %25 : memref<1x!tpu.dma_semaphore, #tpu.memory_space<semaphore_mem>> -> memref<!tpu.dma_semaphore, #tpu.memory_space<semaphore_mem>>
      tpu.wait_dma2 semaphore(%26 : memref<!tpu.dma_semaphore, #tpu.memory_space<semaphore_mem>>) src(%23 : memref<1x128xf32, #tpu.memory_space<any>>) dst(%24 : memref<1x128xf32, #tpu.memory_space<vmem>>)
      %27 = arith.addi %2, %11 : i32
      %28 = arith.index_cast %27 : i32 to index
      %29 = memref.load %arg2[%28] : memref<48xi32, #tpu.memory_space<smem>>
      %c8_i32_25 = arith.constant 8 : i32
      %c0_i32_26 = arith.constant 0 : i32
      %30 = arith.cmpi eq, %c8_i32_25, %c0_i32_26 : i32
      %c1_i32_27 = arith.constant 1 : i32
      %31 = arith.select %30, %c1_i32_27, %c8_i32_25 : i32
      %32 = arith.remsi %11, %31 : i32
      %c0_i32_28 = arith.constant 0 : i32
      %33 = arith.cmpi ne, %32, %c0_i32_28 : i32
      %c0_i32_29 = arith.constant 0 : i32
      %34 = arith.cmpi slt, %32, %c0_i32_29 : i32
      %c0_i32_30 = arith.constant 0 : i32
      %35 = arith.cmpi slt, %31, %c0_i32_30 : i32
      %36 = arith.xori %34, %35 : i1
      %37 = arith.andi %36, %33 : i1
      %38 = arith.addi %32, %31 : i32
      %39 = arith.select %37, %38, %32 : i32
      %c10_i32 = arith.constant 10 : i32
      %40 = arith.cmpi slt, %29, %c10_i32 : i32
      %41 = arith.extui %40 : i1 to i32
      %c0_i32_31 = arith.constant 0 : i32
      %42 = arith.cmpi ne, %41, %c0_i32_31 : i32
      scf.if %42 {
        %c0_i32_34 = arith.constant 0 : i32
        %46 = tpu.memref_slice %arg3[%29, %c0_i32_34] : memref<10x128xf32, #tpu.memory_space<any>> -> memref<1x128xf32, #tpu.memory_space<any>>
        %c0_i32_35 = arith.constant 0 : i32
        %47 = tpu.memref_slice %arg6[%11, %c0_i32_35] : memref<24x128xf32, #tpu.memory_space<vmem>> -> memref<1x128xf32, #tpu.memory_space<vmem>>
        %48 = tpu.memref_slice %arg7[%39] : memref<8x!tpu.dma_semaphore, #tpu.memory_space<semaphore_mem>> -> memref<1x!tpu.dma_semaphore, #tpu.memory_space<semaphore_mem>>
        %49 = tpu.memref_squeeze %48 : memref<1x!tpu.dma_semaphore, #tpu.memory_space<semaphore_mem>> -> memref<!tpu.dma_semaphore, #tpu.memory_space<semaphore_mem>>
        tpu.enqueue_dma source(%46 : memref<1x128xf32, #tpu.memory_space<any>>) target(%47 : memref<1x128xf32, #tpu.memory_space<vmem>>) target_semaphore(%49 : memref<!tpu.dma_semaphore, #tpu.memory_space<semaphore_mem>>)
      } else {
      }
      %c10_i32_32 = arith.constant 10 : i32
      %43 = arith.cmpi sge, %29, %c10_i32_32 : i32
      %44 = arith.extui %43 : i1 to i32
      %c0_i32_33 = arith.constant 0 : i32
      %45 = arith.cmpi ne, %44, %c0_i32_33 : i32
      scf.if %45 {
        %c10_i32_34 = arith.constant 10 : i32
        %46 = arith.subi %29, %c10_i32_34 : i32
        %c0_i32_35 = arith.constant 0 : i32
        %47 = tpu.memref_slice %arg4[%46, %c0_i32_35] : memref<64x128xf32, #tpu.memory_space<any>> -> memref<1x128xf32, #tpu.memory_space<any>>
        %c0_i32_36 = arith.constant 0 : i32
        %48 = tpu.memref_slice %arg6[%11, %c0_i32_36] : memref<24x128xf32, #tpu.memory_space<vmem>> -> memref<1x128xf32, #tpu.memory_space<vmem>>
        %49 = tpu.memref_slice %arg7[%39] : memref<8x!tpu.dma_semaphore, #tpu.memory_space<semaphore_mem>> -> memref<1x!tpu.dma_semaphore, #tpu.memory_space<semaphore_mem>>
        %50 = tpu.memref_squeeze %49 : memref<1x!tpu.dma_semaphore, #tpu.memory_space<semaphore_mem>> -> memref<!tpu.dma_semaphore, #tpu.memory_space<semaphore_mem>>
        tpu.enqueue_dma source(%47 : memref<1x128xf32, #tpu.memory_space<any>>) target(%48 : memref<1x128xf32, #tpu.memory_space<vmem>>) target_semaphore(%50 : memref<!tpu.dma_semaphore, #tpu.memory_space<semaphore_mem>>)
      } else {
      }
    }
    %c16_i32_4 = arith.constant 16 : i32
    %c0_i32_5 = arith.constant 0 : i32
    %c8_i32_6 = arith.constant 8 : i32
    %5 = arith.addi %c0_i32_5, %c8_i32_6 : i32
    %c1_i32_7 = arith.constant 1 : i32
    scf.for %arg8 = %c0_i32_5 to %5 step %c1_i32_7  : i32 {
      %c1_i32_13 = arith.constant 1 : i32
      %10 = arith.muli %arg8, %c1_i32_13 : i32
      %c16_i32_14 = arith.constant 16 : i32
      %11 = arith.addi %c16_i32_14, %10 : i32
      %c8_i32_15 = arith.constant 8 : i32
      %c0_i32_16 = arith.constant 0 : i32
      %12 = arith.cmpi eq, %c8_i32_15, %c0_i32_16 : i32
      %c1_i32_17 = arith.constant 1 : i32
      %13 = arith.select %12, %c1_i32_17, %c8_i32_15 : i32
      %14 = arith.remsi %11, %13 : i32
      %c0_i32_18 = arith.constant 0 : i32
      %15 = arith.cmpi ne, %14, %c0_i32_18 : i32
      %c0_i32_19 = arith.constant 0 : i32
      %16 = arith.cmpi slt, %14, %c0_i32_19 : i32
      %c0_i32_20 = arith.constant 0 : i32
      %17 = arith.cmpi slt, %13, %c0_i32_20 : i32
      %18 = arith.xori %16, %17 : i1
      %19 = arith.andi %18, %15 : i1
      %20 = arith.addi %14, %13 : i32
      %21 = arith.select %19, %20, %14 : i32
      %c0_i32_21 = arith.constant 0 : i32
      %c0_i32_22 = arith.constant 0 : i32
      %22 = tpu.memref_slice %arg4[%c0_i32_21, %c0_i32_22] : memref<64x128xf32, #tpu.memory_space<any>> -> memref<1x128xf32, #tpu.memory_space<any>>
      %c0_i32_23 = arith.constant 0 : i32
      %23 = tpu.memref_slice %arg6[%11, %c0_i32_23] : memref<24x128xf32, #tpu.memory_space<vmem>> -> memref<1x128xf32, #tpu.memory_space<vmem>>
      %24 = tpu.memref_slice %arg7[%21] : memref<8x!tpu.dma_semaphore, #tpu.memory_space<semaphore_mem>> -> memref<1x!tpu.dma_semaphore, #tpu.memory_space<semaphore_mem>>
      %25 = tpu.memref_squeeze %24 : memref<1x!tpu.dma_semaphore, #tpu.memory_space<semaphore_mem>> -> memref<!tpu.dma_semaphore, #tpu.memory_space<semaphore_mem>>
      tpu.wait_dma2 semaphore(%25 : memref<!tpu.dma_semaphore, #tpu.memory_space<semaphore_mem>>) src(%22 : memref<1x128xf32, #tpu.memory_space<any>>) dst(%23 : memref<1x128xf32, #tpu.memory_space<vmem>>)
    }
    %c8_i32_8 = arith.constant 8 : i32
    %c0 = arith.constant 0 : index
    %c0_9 = arith.constant 0 : index
    %6 = vector.load %arg6[%c0, %c0_9] : memref<24x128xf32, #tpu.memory_space<vmem>>, vector<24x128xf32>
    %c0_10 = arith.constant 0 : index
    %c0_11 = arith.constant 0 : index
    %c0_12 = arith.constant 0 : index
    %7 = vector.load %arg5[%c0_10, %c0_11, %c0_12] : memref<1x24x128xf32, #tpu.memory_space<vmem>>, vector<1x24x128xf32>
    %8 = vector.shape_cast %7 : vector<1x24x128xf32> to vector<24x128xf32>
    %9 = vector.shape_cast %6 : vector<24x128xf32> to vector<1x24x128xf32>
    tpu.vector_store %arg5[%c0_10, %c0_11, %c0_12], %9 {strides = array<i32>} : memref<1x24x128xf32, #tpu.memory_space<vmem>>, vector<1x24x128xf32>,
    return
  }
  func.func @transform_2(%arg0: i32, %arg1: i32, %arg2: memref<48xi32, #tpu.memory_space<smem>>) -> (i32, i32, i32) {
    %c0_i32 = arith.constant 0 : i32
    %c0_i32_0 = arith.constant 0 : i32
    return %arg0, %arg1, %c0_i32 : i32, i32, i32
  }
}

</mosaic_0001>

<bundles_post_ra>
// kernel: tpu_custom_call.1
= control target key start
LH: loop header
LB: loop body
LE: loop exit
PB: predicated region body
PF: predicated region fallthrough
CT: control target
= control target key end

     0   :  { %s711_s12 = smov [#allocation5]   ;;  %s998_s0 = inlined_call_operand.hbm [shape: s32[48], index: 0, kind: input, shape index: {}]   ;;  %s999_s1 = inlined_call_operand.hbm [shape: f32[10,128], index: 1, kind: input, shape index: {}]   ;;  %s1000_s2 = inlined_call_operand.hbm [shape: f32[64,128], index: 2, kind: input, shape index: {}]   ;;  %s1001_s3 = inlined_call_operand.hbm [shape: f32[2,24,128], index: 3, kind: output, shape index: {}]  }
   0x1   :  { %9 = dma.hbm_to_smem %s998_s0, 16, %s711_s12, [#allocation4] }
   0x2   :  { %673 = dma.done.wait [#allocation4], 16 }
   0x3   :  { %674 = vsyncadd [#allocation4], 4294967280 }
   0x4   :  { %11 = sfence }
   0x5   :  { %12 = vsyncpa [#allocation7], 0 }
   0x6   :  { %14 = vsyncpa [#allocation7 + $0x1], 0  ;;  %s739_s15 = smov 0   ;;  %s741_s16 = smov 0  }
   0x7   :  { %s743_s17 = smov 0   ;;  %s745_s18 = smov 0  }
   0x8 LB: > { %s29_s0 = sadd.s32 1, %s693_s17  ;;  %s391_s19 = sadd.s32 4294967295, %s697_s18   ;;  %s697_s18 = sphi %s745_s18, %s20_s18   ;;  %s693_s17 = sphi %s743_s17, %s1020_s17   ;;  %s689_s16 = sphi %s741_s16, %s1022_s16   ;;  %s685_s15 = sphi %s739_s15, %s1021_s15  }
   0x9   : > { %p31_p0 = scmp.ge.s32.totalorder %s29_s0, 2  ;;  %p47_p1 = scmp.ne.s32.totalorder %s689_s16, %s685_s15 }
   0xa   : > { %s38_s20 = sadd.s32 1, %s689_s16  ;;  %p48_p2 = scmp.eq.s32.totalorder %s391_s19, 1 }
   0xb   : > { %s1024_s0 = smov (%p31_p0, %s29_s0), 0  ;;  %p42_p3 = scmp.eq.s32.totalorder %s697_s18, 1 }
   0xc   : > { %1006 = sst [smem:[#allocation22_spill]] %s1024_s0  ;;  %s33_s21 = ssub.s32 %s693_s17, %s1024_s0 }
   0xd   : > { %p36_p4 = scmp.eq.s32.totalorder %s33_s21, 0  ;;  %p392_p5 = scmp.ne.s32.totalorder %s33_s21, 0 }
   0xe   : > { %p769_p6 = por %p48_p2, %p47_p1  ;;  %p393_p8 = scmp.ge.s32.totalorder %s697_s18, 2 }
   0xf   : > { %s774_s23 = scalar_select %p36_p4, %s689_s16, %s38_s20  }
  0x10   : > { %p776_p7 = por %p392_p5, %p42_p3  ;;  %57 = sbr.rel (%p393_p8) target bundleno = 182 (0xb6), region = 12 }
  0x11   : > { %1008 = sst [smem:[#allocation23_spill]] %s774_s23  ;;  %s1002_s25 = sand.u32 (!%p393_p8), 1, %s689_s16  }
  0x12   : > { %s427_s27 = smul.u32 (!%p393_p8), 24, %s1002_s25  ;;  %s787_s29 = smov (!%p393_p8), 0  }
  0x14   : > { %s785_s28 = scalar_lea.vmem (!%p393_p8), [#allocation6], %s427_s27 }
  0x15 LB: >> { %s1010_s26 = smul.u32 24, %s693_s17  ;;  %p77_p9 = scmp.lt.s32.totalorder %s701_s29, 0  ;;  %s701_s29 = sphi %s787_s29, %s74_s29  }
  0x16   : >> { %s78_s5 = ssub.s32 0, %s701_s29  ;;  %s95_s8 = scalar_lea.vmem [#allocation2], %s701_s29 }
  0x17   : >> { %s75_s30 = sadd.s32 %s701_s29, %s1010_s26  ;;  %s394_s6 = smin.u32 %s701_s29, %s78_s5 }
  0x18   : >> { %s796_s4 = sld [smem:[#allocation5 + %s75_s30]]  ;;  %s80_s7 = sand.u32 7, %s394_s6  }
  0x19   : >> { %s104_s9 = sshll.u32 %s95_s8, 4  ;;  %s81_s10 = ssub.s32 0, %s80_s7  ;;  %s801_s9 = int_to_ptr.vmem [resolvable:$true] %s104_s9 }
  0x1a   : >> { %s1026_s10 = smov (!%p77_p9, %s81_s10), %s80_s7  ;;  %s1004_s6 = scalar_lea.hbm %s999_s1, 256 }
  0x1b   : >> { %p396_p10 = scmp.lt.s32.totalorder %s1026_s10, 0  ;;  %s87_s11 = sadd.s32 8, %s1026_s10 }
  0x1d   : >> { %s1028_s11 = smov (!%p396_p10, %s87_s11), %s1026_s10 }
  0x1e   : >> { %p443_p11 = scmp.lt.s32.totalorder %s796_s4, 10  ;;  %s398_s12 = sshll.u32 %s796_s4, 4 }
  0x1f   : >> { %s94_s19 = scalar_lea.hbm %s999_s1, %s398_s12  ;;  %p397_p12 = scmp.ge.s32.totalorder %s796_s4, 10 }
  0x20   : >> { %s400_s20 = sadd.s32 4294967286, %s796_s4  ;;  %s96_s21 = scalar_lea.sflag [#allocation3], %s1028_s11 }
  0x21   : >> { %s515_s27 = scalar_lea.hbm %s94_s19, 16  ;;  %p520_p2 = scmp.lt.s32.totalorder %s94_s19, %s999_s1 }
  0x22   : >> { %p516_p13 = scmp.ne.s32.totalorder %s94_s19, %s515_s27  ;;  %p521_p3 = scmp.lt.s32.totalorder %s1004_s6, %s515_s27 }
  0x24   : >> { %p517_p0 = pnand %p516_p13, %p443_p11  ;;  %p522_p4 = por %p521_p3, %p520_p2 }
  0x26   : >> { %p518_p1 = pneg %p517_p0 }
  0x28   : >> { %p523_p5 = pnand %p522_p4, %p518_p1 }
  0x2a   : >> { %526 = shalt.err (!%p523_p5)  }
  0x2b   : >> { %s527_s12 = scalar_lea.vmem %s801_s9, 16  ;;  %s712_s30 = smov [#allocation2]  }
  0x2c   : >> { %p827_p8 = scmp.ne.s32.totalorder %s801_s9, %s527_s12  ;;  %s531_s5 = sshll.u32 %s712_s30, 4  ;;  %s835_s5 = int_to_ptr.vmem [resolvable:$false] %s531_s5 }
  0x2d   : >> { %s1003_s27 = scalar_lea.vmem %s835_s5, 384  ;;  %p534_p13 = scmp.lt.s32.totalorder %s801_s9, %s835_s5 }
  0x2e   : >> { %p529_p9 = pnand %p827_p8, %p443_p11  ;;  %p535_p0 = scmp.lt.s32.totalorder %s1003_s27, %s527_s12 }
  0x30   : >> { %p530_p10 = pneg %p529_p9  ;;  %p842_p1 = por %p535_p0, %p534_p13 }
  0x32   : >> { %p537_p2 = pnand %p842_p1, %p530_p10 }
  0x34   : >> { %540 = shalt.err (!%p537_p2)  }
  0x35   : >> { %430 = dma.hbm_to_vmem [thread:$0]  (%p443_p11), %s94_s19, 16, %s801_s9, %s96_s21 }
  0x36   : >> { %s401_s8 = sshll.u32 %s400_s20, 4  ;;  %s545_s6 = scalar_lea.hbm %s1000_s2, 1024 }
  0x37   : >> { %s114_s12 = scalar_lea.hbm %s1000_s2, %s401_s8 }
  0x38   : >> { %s541_s30 = scalar_lea.hbm %s114_s12, 16  ;;  %p546_p9 = scmp.lt.s32.totalorder %s114_s12, %s1000_s2 }
  0x39   : >> { %p542_p3 = scmp.ne.s32.totalorder %s114_s12, %s541_s30  ;;  %p547_p11 = scmp.lt.s32.totalorder %s545_s6, %s541_s30 }
  0x3b   : >> { %p543_p4 = pnand %p542_p3, %p397_p12  ;;  %p548_p10 = por %p547_p11, %p546_p9 }
  0x3d   : >> { %p544_p5 = pneg %p543_p4 }
  0x3f   : >> { %p549_p13 = pnand %p548_p10, %p544_p5 }
  0x41   : >> { %552 = shalt.err (!%p549_p13)  }
  0x42   : >> { %p555_p0 = pnand %p827_p8, %p397_p12 }
  0x44   : >> { %p556_p2 = pneg %p555_p0 }
  0x46   : >> { %p563_p3 = pnand %p556_p2, %p842_p1 }
  0x48   : >> { %566 = shalt.err (!%p563_p3)  }
  0x49   : >> { %432 = dma.hbm_to_vmem [thread:$0]  (%p397_p12), %s114_s12, 16, %s801_s9, %s96_s21 }
  0x4a   : >> { %s74_s29 = sadd.s32 1, %s701_s29  }
  0x4b   : >> { %p71_p4 = scmp.ge.s32.totalorder %s74_s29, 8  }
  0x4c   : > { %s882_s0 = smov (%p71_p4), 0  }
  0x4d   : > { %73 = sbr.rel (!%p71_p4) target bundleno = 21 (0x15), region = 118 }
  0x52 LB: >> { %s134_s23 = sadd.s32 8, %s705_s0  ;;  %p135_p8 = scmp.lt.s32.totalorder %s705_s0, 0  ;;  %s705_s0 = sphi %s882_s0, %s133_s0  }
  0x53   : >> { %s136_s25 = ssub.s32 0, %s705_s0 }
  0x54   : >> { %s402_s26 = smin.u32 %s705_s0, %s136_s25 }
  0x55   : >> { %s138_s4 = sand.u32 7, %s402_s26  }
  0x56   : >> { %s139_s9 = ssub.s32 0, %s138_s4 }
  0x57   : >> { %s1030_s9 = smov (!%p135_p8, %s139_s9), %s138_s4 }
  0x58   : >> { %p404_p12 = scmp.lt.s32.totalorder %s1030_s9, 0  ;;  %s145_s29 = sadd.s32 8, %s1030_s9 }
  0x5a   : >> { %s1032_s29 = smov (!%p404_p12, %s145_s29), %s1030_s9 }
  0x5b   : >> { %s147_s11 = scalar_lea.sflag [#allocation3], %s1032_s29 }
  0x5c   : >> { %675 = dma.done.wait %s147_s11, 16 }
  0x5d   : >> { %676 = vsyncadd %s147_s11, 4294967280  ;;  %s1013_s20 = smul.u32 24, %s693_s17  ;;  %p153_p1 = scmp.lt.s32.totalorder %s134_s23, 0 }
  0x5e   : >> { %s154_s27 = ssub.s32 0, %s134_s23  ;;  %s342_s10 = scalar_lea.vmem [#allocation2], %s705_s0 }
  0x5f   : >> { %s151_s21 = sadd.s32 %s134_s23, %s1013_s20  ;;  %s405_s7 = smin.u32 %s154_s27, %s134_s23 }
  0x60   : >> { %s893_s14 = sld [smem:[#allocation5 + %s151_s21]]  ;;  %s156_s8 = sand.u32 7, %s405_s7  }
  0x61   : >> { %s343_s13 = scalar_lea.vmem %s342_s10, 8 [#allocation2]  ;;  %s157_s12 = ssub.s32 0, %s156_s8 }
  0x62   : >> { %s180_s30 = sshll.u32 %s343_s13, 4  ;;  %s1034_s12 = smov (!%p153_p1, %s157_s12), %s156_s8  ;;  %s896_s30 = int_to_ptr.vmem [resolvable:$true] %s180_s30 }
  0x63   : >> { %p407_p5 = scmp.lt.s32.totalorder %s1034_s12, 0  ;;  %s163_s19 = sadd.s32 8, %s1034_s12 }
  0x64   : >> { %s1014_s8 = scalar_lea.hbm %s999_s1, 256 }
  0x65   : >> { %s1036_s19 = smov (!%p407_p5, %s163_s19), %s1034_s12 }
  0x66   : >> { %p445_p9 = scmp.lt.s32.totalorder %s893_s14, 10  ;;  %s409_s25 = sshll.u32 %s893_s14, 4 }
  0x67   : >> { %s170_s23 = scalar_lea.hbm %s999_s1, %s409_s25  ;;  %p408_p11 = scmp.ge.s32.totalorder %s893_s14, 10 }
  0x68   : >> { %s411_s9 = sadd.s32 4294967286, %s893_s14  ;;  %s172_s29 = scalar_lea.sflag [#allocation3], %s1036_s19 }
  0x69   : >> { %s567_s11 = scalar_lea.hbm %s170_s23, 16  ;;  %p572_p2 = scmp.lt.s32.totalorder %s170_s23, %s999_s1 }
  0x6a   : >> { %p568_p10 = scmp.ne.s32.totalorder %s170_s23, %s567_s11  ;;  %p573_p3 = scmp.lt.s32.totalorder %s1014_s8, %s567_s11 }
  0x6c   : >> { %p569_p13 = pnand %p568_p10, %p445_p9  ;;  %p574_p4 = por %p573_p3, %p572_p2 }
  0x6e   : >> { %p570_p0 = pneg %p569_p13 }
  0x70   : >> { %p575_p8 = pnand %p574_p4, %p570_p0 }
  0x72   : >> { %578 = shalt.err (!%p575_p8)  }
  0x73   : >> { %s579_s10 = scalar_lea.vmem %s896_s30, 16  ;;  %p586_p10 = scmp.lt.s32.totalorder %s896_s30, %s835_s5 }
  0x74   : >> { %p919_p12 = scmp.ne.s32.totalorder %s896_s30, %s579_s10  ;;  %s1016_s12 = scalar_lea.vmem %s835_s5, 384 }
  0x75   : >> { %p587_p13 = scmp.lt.s32.totalorder %s1016_s12, %s579_s10 }
  0x76   : >> { %p581_p1 = pnand %p919_p12, %p445_p9 }
  0x77   : >> { %p931_p0 = por %p587_p13, %p586_p10 }
  0x78   : >> { %p582_p5 = pneg %p581_p1 }
  0x7a   : >> { %p589_p2 = pnand %p931_p0, %p582_p5 }
  0x7c   : >> { %592 = shalt.err (!%p589_p2)  }
  0x7d   : >> { %434 = dma.hbm_to_vmem [thread:$0]  (%p445_p9), %s170_s23, 16, %s896_s30, %s172_s29 }
  0x7e   : >> { %s412_s26 = sshll.u32 %s411_s9, 4 }
  0x7f   : >> { %s190_s20 = scalar_lea.hbm %s1000_s2, %s412_s26 }
  0x80   : >> { %s593_s21 = scalar_lea.hbm %s190_s20, 16  ;;  %p598_p1 = scmp.lt.s32.totalorder %s190_s20, %s1000_s2 }
  0x81   : >> { %p594_p3 = scmp.ne.s32.totalorder %s190_s20, %s593_s21  ;;  %p599_p5 = scmp.lt.s32.totalorder %s545_s6, %s593_s21 }
  0x83   : >> { %p595_p4 = pnand %p594_p3, %p408_p11  ;;  %p600_p9 = por %p599_p5, %p598_p1 }
  0x85   : >> { %p596_p8 = pneg %p595_p4 }
  0x87   : >> { %p601_p10 = pnand %p600_p9, %p596_p8 }
  0x89   : >> { %604 = shalt.err (!%p601_p10)  }
  0x8a   : >> { %p607_p13 = pnand %p919_p12, %p408_p11 }
  0x8c   : >> { %p608_p2 = pneg %p607_p13 }
  0x8e   : >> { %p615_p3 = pnand %p608_p2, %p931_p0 }
  0x90   : >> { %618 = shalt.err (!%p615_p3)  }
  0x91   : >> { %436 = dma.hbm_to_vmem [thread:$0]  (%p408_p11), %s190_s20, 16, %s896_s30, %s172_s29 }
  0x92   : >> { %s133_s0 = sadd.s32 1, %s705_s0  }
  0x93   : >> { %p130_p4 = scmp.ge.s32.totalorder %s133_s0, 16  }
  0x94   : > { %s707_s23 = smov (%p130_p4), 0  }
  0x95   : > { %132 = sbr.rel (!%p130_p4) target bundleno = 82 (0x52), region = 129 }
  0x9a LB: >> { %s210_s9 = sadd.s32 16, %s709_s23  ;;  %s709_s23 = sphi %s707_s23, %s209_s23  }
  0x9b   : >> { %p211_p12 = scmp.lt.s32.totalorder %s210_s9, 0  ;;  %s212_s13 = ssub.s32 0, %s210_s9 }
  0x9c   : >> { %s413_s12 = smin.u32 %s212_s13, %s210_s9 }
  0x9d   : >> { %s214_s25 = sand.u32 7, %s413_s12  }
  0x9e   : >> { %s215_s14 = ssub.s32 0, %s214_s25 }
  0x9f   : >> { %s1038_s14 = smov (!%p211_p12, %s215_s14), %s214_s25 }
  0xa0   : >> { %p415_p0 = scmp.lt.s32.totalorder %s1038_s14, 0  ;;  %s221_s19 = sadd.s32 8, %s1038_s14 }
  0xa2   : >> { %s1040_s19 = smov (!%p415_p0, %s221_s19), %s1038_s14 }
  0xa3   : >> { %s223_s30 = scalar_lea.sflag [#allocation3], %s1040_s19 }
  0xa4   : >> { %677 = dma.done.wait %s223_s30, 16 }
  0xa5   : >> { %678 = vsyncadd %s223_s30, 4294967280  ;;  %s209_s23 = sadd.s32 1, %s709_s23  }
  0xa6   : >> { %p206_p11 = scmp.ge.s32.totalorder %s209_s23, 8  }
  0xa7   : > { %v227_v0 = vld [vmem:[#allocation2] sm:$0xff] (%p206_p11)  ;;  %v228_v1 = vld [vmem:[#allocation2 + $0x8] sm:$0xff] (%p206_p11)  ;;  %v229_v2 = vld [vmem:[#allocation2 + $0x10] sm:$0xff] (%p206_p11)  ;;  %s428_s6 = smul.u32 (%p206_p11), 384, %s693_s17  ;;  %s249_s5 = sshll.u32 (%p206_p11), %s785_s28, 4  ;;  %s250_s5 = int_to_ptr.vmem [resolvable:$true] %s249_s5 }
  0xa8   : > { %208 = sbr.rel (!%p206_p11) target bundleno = 154 (0x9a), region = 140  ;;  %230 = vst [vmem:[%s785_s28] sm:$0xff] (%p206_p11), %v227_v0  ;;  %231 = vst [vmem:[%s785_s28 + $0x8] sm:$0xff] (%p206_p11), %v228_v1  ;;  %s1018_s4 = sand.u32 (%p206_p11), 1, %s689_s16  }
  0xa9   : > { %232 = vst [vmem:[%s785_s28 + $0x10] sm:$0xff] (%p206_p11), %v229_v2  ;;  %s248_s26 = scalar_lea.hbm (%p206_p11), %s1001_s3, %s428_s6  ;;  %s234_s11 = scalar_lea.sflag (%p206_p11), [#allocation7], %s1018_s4 }
  0xaa   : > { %s619_s20 = scalar_lea.vmem (%p206_p11), %s250_s5, 384  ;;  %s713_s21 = smov (%p206_p11), [#allocation6]  }
  0xab   : > { %p620_p8 = scmp.ne.s32.totalorder (%p206_p11), %s250_s5, %s619_s20  ;;  %s623_s27 = sshll.u32 (%p206_p11), %s713_s21, 4  ;;  %s624_s27 = int_to_ptr.vmem [resolvable:$false] %s623_s27 }
  0xac   : > { %s625_s17 = scalar_lea.vmem (%p206_p11), %s624_s27, 768  ;;  %p626_p9 = scmp.lt.s32.totalorder (%p206_p11), %s250_s5, %s624_s27 }
  0xad   : > { %p621_p1 = pnand %p620_p8, %p776_p7  ;;  %p627_p10 = scmp.lt.s32.totalorder %s625_s17, %s619_s20 }
  0xaf   : > { %p622_p5 = pneg %p621_p1  ;;  %p628_p13 = por %p627_p10, %p626_p9 }
  0xb1   : > { %p629_p2 = pnand %p628_p13, %p622_p5 }
  0xb3   : > { %632 = shalt.err (!%p629_p2)
}
  0xb4   : > { %s714_s28 = smov 128   ;;  %s715_s7 = smov 8  }
  0xb5   : > { %437 = dma.vmem_to_hbm [thread:$0]  (%p776_p7), %s250_s5, 384, %s248_s26, %s234_s11, %s714_s28, %s714_s28, %s715_s7  }
  0xb6 PF: > { %p447_p3 = scmp.ge.s32.totalorder %s697_s18, 1  ;;  %s264_s8 = sand.u32 1, %s685_s15  }
  0xb7   : > { %s265_s10 = scalar_lea.sflag [#allocation7], %s264_s8 }
  0xb8   : > { %p440_p4 = pnand %p447_p3, %p769_p6 }
  0xba   : > { %p441_p12 = pneg %p440_p4 }
  0xbc   : > { %680 = dma.done.wait (%p441_p12), %s265_s10, 384  }
  0xbd   : > { %682 = vsyncadd (%p441_p12), %s265_s10, 4294966912  ;;  %s20_s18 = sadd.s32 1, %s697_s18   ;;  %s1019_s23 = sld [smem:[#allocation23_spill]] }
  0xbe   : > { %p17_p0 = scmp.ge.s32.totalorder %s20_s18, 3   ;;  %s1020_s17 = sld [smem:[#allocation22_spill]] }
  0xbf   : > { %s1021_s15 = smov %s689_s16 }
  0xc0   :  { %19 = sbr.rel (!%p17_p0) target bundleno = 8 (0x8), region = 151 }
  0xc3   : > { %s1022_s16 = smov %s1019_s23 }
  0xc5   :  { %270 = vsyncpa [#allocation7], 1 }
  0xc6   :  { %272 = vsyncpa [#allocation7 + $0x1], 1 }
  0xc7   :  { %273 = vsyncmov [#allocation3] }
  0xca   :  { %s274_s22 = vpop.sfrf %273 }
  0xcb   :  { %p419_p6 = scmp.ne.s32.totalorder %s274_s22, 0 }
  0xcd   :  { %278 = shalt.err (%p419_p6)  }
  0xce   :  { %280 = vsyncmov [#allocation3 + $0x1] }
  0xd1   :  { %s281_s24 = vpop.sfrf %280 }
  0xd2   :  { %p420_p7 = scmp.ne.s32.totalorder %s281_s24, 0 }
  0xd4   :  { %285 = shalt.err (%p420_p7)  }
  0xd5   :  { %287 = vsyncmov [#allocation3 + $0x2] }
  0xd8   :  { %s288_s9 = vpop.sfrf %287 }
  0xd9   :  { %p421_p11 = scmp.ne.s32.totalorder %s288_s9, 0 }
  0xdb   :  { %292 = shalt.err (%p421_p11)  }
  0xdc   :  { %294 = vsyncmov [#allocation3 + $0x3] }
  0xdf   :  { %s295_s13 = vpop.sfrf %294 }
  0xe0   :  { %p422_p8 = scmp.ne.s32.totalorder %s295_s13, 0 }
  0xe2   :  { %299 = shalt.err (%p422_p8)  }
  0xe3   :  { %301 = vsyncmov [#allocation3 + $0x4] }
  0xe6   :  { %s302_s18 = vpop.sfrf %301 }
  0xe7   :  { %p423_p1 = scmp.ne.s32.totalorder %s302_s18, 0 }
  0xe9   :  { %306 = shalt.err (%p423_p1)  }
  0xea   :  { %308 = vsyncmov [#allocation3 + $0x5] }
  0xed   :  { %s309_s1 = vpop.sfrf %308 }
  0xee   :  { %p424_p5 = scmp.ne.s32.totalorder %s309_s1, 0 }
  0xf0   :  { %313 = shalt.err (%p424_p5)  }
  0xf1   :  { %315 = vsyncmov [#allocation3 + $0x6] }
  0xf4   :  { %s316_s2 = vpop.sfrf %315 }
  0xf5   :  { %p425_p9 = scmp.ne.s32.totalorder %s316_s2, 0 }
  0xf7   :  { %320 = shalt.err (%p425_p9)  }
  0xf8   :  { %322 = vsyncmov [#allocation3 + $0x7] }
  0xfb   :  { %s323_s3 = vpop.sfrf %322 }
  0xfc   :  { %p426_p10 = scmp.ne.s32.totalorder %s323_s3, 0 }
  0xfe   :  { %327 = shalt.err (%p426_p10)  }

</bundles_post_ra>
